<compile_context>
chip_gen: v5e
topology: v5e:2x2
jax: 0.10.0
libtpu: 0.0.40
codegen_flags: <defaults>
</compile_context>

<pallas_src>
import functools

import jax
import jax.numpy as jnp
import numpy as np
from jax.experimental import pallas as pl
from jax.experimental.pallas import tpu as pltpu


def _lstm_net_kernel(deuling, T, B, H, A,
                     x_ref, wih_ref, whh_ref, b_ref, whead_ref, bhead_ref,
                     q_ref, hn_ref, cn_ref, hs_scr):
    # ---- Input projection for ALL timesteps at once (off the serial path). ----
    # x_ref: (T*B, I), wih_ref: (I, 4H), b_ref: (1, 4H)
    x_proj = (jnp.dot(x_ref[...], wih_ref[...], preferred_element_type=jnp.float32)
              + b_ref[...])                                   # (T*B, 4H)

    whh = whh_ref[...]                                        # (H, 4H), loaded once

    # ---- Serial LSTM recurrence (zero initial state == get_h0()). -------------
    # T is tiny and static -> full unroll; all indices are Python ints (static
    # slices), which keeps the lowering simple and gives the scheduler the whole
    # trace. Gate order matches torch.nn.LSTM: [i, f, g, o].
    h = jnp.zeros((B, H), jnp.float32)
    c = jnp.zeros((B, H), jnp.float32)
    for t in range(T):
        gates = x_proj[t * B:(t + 1) * B, :] + jnp.dot(
            h, whh, preferred_element_type=jnp.float32)       # (B, 4H)
        i_g = jax.nn.sigmoid(gates[:, 0 * H:1 * H])
        f_g = jax.nn.sigmoid(gates[:, 1 * H:2 * H])
        g_g = jnp.tanh(gates[:, 2 * H:3 * H])
        o_g = jax.nn.sigmoid(gates[:, 3 * H:4 * H])
        c = f_g * c + i_g * g_g
        h = o_g * jnp.tanh(c)
        hs_scr[t * B:(t + 1) * B, :] = h                      # stash h_t for the head

    hn_ref[...] = h
    cn_ref[...] = c

    # ---- Batched Q / (Q,V) head over all timesteps: one matmul, one store. ----
    h_all = hs_scr[...]                                       # (T*B, H)
    head = (jnp.dot(h_all, whead_ref[...], preferred_element_type=jnp.float32)
            + bhead_ref[...])                                 # (T*B, A) or (T*B, A+1)
    if deuling:
        q = head[:, :A]
        v = head[:, A:A + 1]
        q = q + v - jnp.mean(q, axis=1, keepdims=True)
    else:
        q = head
    q_ref[...] = q


def prepare_params(params, deuling=False):
    """One-time parameter prep (transposes, bias fuse, Q/V head fuse).

    Done outside the forward hot path so the per-call wrapper does no extra
    XLA transpose/concat work.
    """
    H = params["w_hh"].shape[1]
    prep = {
        "w_ih_t": jnp.asarray(params["w_ih"], jnp.float32).T,                 # (I, 4H)
        "w_hh_t": jnp.asarray(params["w_hh"], jnp.float32).T,                 # (H, 4H)
        "b": (params["b_ih"] + params["b_hh"]).reshape(1, 4 * H).astype(jnp.float32),
    }
    if deuling:
        w_head = jnp.concatenate([params["w_q"], params["w_v"]], axis=0)      # (A+1, H)
        b_head = jnp.concatenate([params["b_q"], params["b_v"]], axis=0)      # (A+1,)
    else:
        w_head = params["w_q"]                                                # (A, H)
        b_head = params["b_q"]                                                # (A,)
    prep["w_head_t"] = jnp.asarray(w_head, jnp.float32).T                     # (H, A[+1])
    prep["b_head"] = jnp.asarray(b_head, jnp.float32).reshape(1, -1)
    return prep


def lstm_net_forward(obs, prep, deuling=False):
    """Pallas equivalent of LSTMNet.forward(obs, hidden=None)."""
    # TODO(synk): optional `hidden` initial-state argument not plumbed through;
    # zero init (get_h0 semantics) only, matching forward(obs, hidden=None).
    obs = obs.astype(jnp.float32)
    T, B, I = obs.shape
    H = prep["w_hh_t"].shape[0]
    n_head = prep["w_head_t"].shape[1]
    A = n_head - 1 if deuling else n_head

    x2d = obs.reshape(T * B, I)   # merge T,B outside the kernel (free XLA reshape)

    kernel = functools.partial(_lstm_net_kernel, deuling, T, B, H, A)
    vspec = pl.BlockSpec(memory_space=pltpu.MemorySpace.VMEM)

    q2d, h_n, c_n = pl.pallas_call(
        kernel,
        out_shape=(
            jax.ShapeDtypeStruct((T * B, A), jnp.float32),    # Q (flattened T*B)
            jax.ShapeDtypeStruct((B, H), jnp.float32),        # h_n
            jax.ShapeDtypeStruct((B, H), jnp.float32),        # c_n
        ),
        in_specs=[vspec] * 6,
        out_specs=(vspec, vspec, vspec),
        scratch_shapes=[pltpu.VMEM((T * B, H), jnp.float32)], # all h_t for the head
    )(x2d, prep["w_ih_t"], prep["w_hh_t"], prep["b"],
      prep["w_head_t"], prep["b_head"])

    q = q2d.reshape(T, B, A)
    return q, (h_n[None], c_n[None])


def lstm_net_reference(obs, params, deuling=False):
    """Pure-JAX reference (mirrors torch.nn.LSTM + Linear)."""
    T, B, I = obs.shape
    H = params["w_hh"].shape[1]
    wih_t = params["w_ih"].T
    whh_t = params["w_hh"].T
    b = params["b_ih"] + params["b_hh"]

    def step(carry, x_t):
        h, c = carry
        gates = x_t @ wih_t + h @ whh_t + b
        i = jax.nn.sigmoid(gates[:, 0 * H:1 * H])
        f = jax.nn.sigmoid(gates[:, 1 * H:2 * H])
        g = jnp.tanh(gates[:, 2 * H:3 * H])
        o = jax.nn.sigmoid(gates[:, 3 * H:4 * H])
        c_new = f * c + i * g
        h_new = o * jnp.tanh(c_new)
        return (h_new, c_new), h_new

    h0 = jnp.zeros((B, H), jnp.float32)
    c0 = jnp.zeros((B, H), jnp.float32)
    (h_n, c_n), outs = jax.lax.scan(step, (h0, c0), obs)
    q = outs @ params["w_q"].T + params["b_q"]
    if deuling:
        v = outs @ params["w_v"].T + params["b_v"]
        q = q + v - jnp.mean(q, axis=2, keepdims=True)
    return q, (h_n[None], c_n[None])


def init_params(key, input_size, hidden_size, n_actions, deuling):
    # PyTorch-style uniform(-1/sqrt(H), 1/sqrt(H)) init, deterministic via PRNGKey.
    ks = jax.random.split(key, 8)
    s = 1.0 / np.sqrt(hidden_size)
    u = lambda k, shape: jax.random.uniform(k, shape, jnp.float32, -s, s)
    params = {
        "w_ih": u(ks[0], (4 * hidden_size, input_size)),
        "w_hh": u(ks[1], (4 * hidden_size, hidden_size)),
        "b_ih": u(ks[2], (4 * hidden_size,)),
        "b_hh": u(ks[3], (4 * hidden_size,)),
        "w_q": u(ks[4], (n_actions, hidden_size)),
        "b_q": u(ks[5], (n_actions,)),
    }
    if deuling:
        params["w_v"] = u(ks[6], (1, hidden_size))
        params["b_v"] = u(ks[7], (1,))
    return params


if __name__ == "__main__":
    # Small shapes: observation_space.shape = (16,) -> input_size 16,
    # hidden_size=32, action_space.n=6, seq=8, batch=2.
    T, B, I, H, A = 8, 2, 16, 32, 6

    key = jax.random.PRNGKey(0)
    k_obs, k_par = jax.random.split(key)
    obs = jax.random.normal(k_obs, (T, B, I), jnp.float32)

    for deuling in (False, True):
        params = init_params(k_par, I, H, A, deuling)
        prep = prepare_params(params, deuling=deuling)          # one-time param prep
        q, (h_n, c_n) = lstm_net_forward(obs, prep, deuling=deuling)
        jax.block_until_ready(q)
        q_ref, (h_ref, c_ref) = lstm_net_reference(obs, params, deuling=deuling)
        np.testing.assert_allclose(np.asarray(q), np.asarray(q_ref), rtol=1e-5, atol=1e-5)
        np.testing.assert_allclose(np.asarray(h_n), np.asarray(h_ref), rtol=1e-5, atol=1e-5)
        np.testing.assert_allclose(np.asarray(c_n), np.asarray(c_ref), rtol=1e-5, atol=1e-5)

    print("KERNEL_OK")
</pallas_src>

<mosaic_0001>
module attributes {stable_mosaic.version = 11 : i64} {
  func.func @_lstm_net_kernel(%arg0: memref<16x16xf32, #tpu.memory_space<vmem>>, %arg1: memref<16x128xf32, #tpu.memory_space<vmem>>, %arg2: memref<32x128xf32, #tpu.memory_space<vmem>>, %arg3: memref<1x128xf32, #tpu.memory_space<vmem>>, %arg4: memref<32x6xf32, #tpu.memory_space<vmem>>, %arg5: memref<1x6xf32, #tpu.memory_space<vmem>>, %arg6: memref<16x6xf32, #tpu.memory_space<vmem>>, %arg7: memref<2x32xf32, #tpu.memory_space<vmem>>, %arg8: memref<2x32xf32, #tpu.memory_space<vmem>>, %arg9: memref<16x32xf32, #tpu.memory_space<vmem>>) attributes {dimension_semantics = [], scalar_prefetch = 0 : i64, scratch_operands = 1 : i64, tpu.core_type = #tpu.core_type<tc>} {
    %c0 = arith.constant 0 : index
    %c0_0 = arith.constant 0 : index
    %0 = vector.load %arg0[%c0, %c0_0] : memref<16x16xf32, #tpu.memory_space<vmem>>, vector<16x16xf32>
    %c0_1 = arith.constant 0 : index
    %c0_2 = arith.constant 0 : index
    %1 = vector.load %arg1[%c0_1, %c0_2] : memref<16x128xf32, #tpu.memory_space<vmem>>, vector<16x128xf32>
    %cst = arith.constant dense<0.000000e+00> : vector<16x128xf32>
    %2 = tpu.matmul %0, %1, %cst {dimension_numbers = #tpu.dot_dimension_numbers<[1], [0], [0], [1], [0, 0, 1, 1], [], []>} : vector<16x16xf32>, vector<16x128xf32>, vector<16x128xf32> -> vector<16x128xf32>
    %c0_3 = arith.constant 0 : index
    %c0_4 = arith.constant 0 : index
    %3 = vector.load %arg3[%c0_3, %c0_4] : memref<1x128xf32, #tpu.memory_space<vmem>>, vector<1x128xf32>
    %4 = vector.broadcast %3 : vector<1x128xf32> to vector<16x128xf32>
    %5 = arith.addf %2, %4 : vector<16x128xf32>
    %c0_5 = arith.constant 0 : index
    %c0_6 = arith.constant 0 : index
    %6 = vector.load %arg2[%c0_5, %c0_6] : memref<32x128xf32, #tpu.memory_space<vmem>>, vector<32x128xf32>
    %cst_7 = arith.constant 0.000000e+00 : f32
    %7 = vector.broadcast %cst_7 : f32 to vector<2x32xf32>
    %cst_8 = arith.constant 0.000000e+00 : f32
    %8 = vector.broadcast %cst_8 : f32 to vector<2x32xf32>
    %9 = vector.extract_strided_slice %5 {offsets = [0, 0], sizes = [2, 128], strides = [1, 1]} : vector<16x128xf32> to vector<2x128xf32>
    %cst_9 = arith.constant dense<0.000000e+00> : vector<2x128xf32>
    %10 = tpu.matmul %7, %6, %cst_9 {dimension_numbers = #tpu.dot_dimension_numbers<[1], [0], [0], [1], [0, 0, 1, 1], [], []>} : vector<2x32xf32>, vector<32x128xf32>, vector<2x128xf32> -> vector<2x128xf32>
    %11 = arith.addf %9, %10 : vector<2x128xf32>
    %12 = vector.extract_strided_slice %11 {offsets = [0, 0], sizes = [2, 32], strides = [1, 1]} : vector<2x128xf32> to vector<2x32xf32>
    %13 = arith.negf %12 : vector<2x32xf32>
    %14 = math.exp %13 : vector<2x32xf32>
    %cst_10 = arith.constant 1.000000e+00 : f32
    %15 = vector.broadcast %cst_10 : f32 to vector<2x32xf32>
    %16 = arith.addf %15, %14 : vector<2x32xf32>
    %17 = arith.divf %15, %16 : vector<2x32xf32>
    %18 = vector.extract_strided_slice %11 {offsets = [0, 32], sizes = [2, 32], strides = [1, 1]} : vector<2x128xf32> to vector<2x32xf32>
    %19 = arith.negf %18 : vector<2x32xf32>
    %20 = math.exp %19 : vector<2x32xf32>
    %cst_11 = arith.constant 1.000000e+00 : f32
    %21 = vector.broadcast %cst_11 : f32 to vector<2x32xf32>
    %22 = arith.addf %21, %20 : vector<2x32xf32>
    %23 = arith.divf %21, %22 : vector<2x32xf32>
    %24 = vector.extract_strided_slice %11 {offsets = [0, 64], sizes = [2, 32], strides = [1, 1]} : vector<2x128xf32> to vector<2x32xf32>
    %25 = math.tanh %24 : vector<2x32xf32>
    %26 = vector.extract_strided_slice %11 {offsets = [0, 96], sizes = [2, 32], strides = [1, 1]} : vector<2x128xf32> to vector<2x32xf32>
    %27 = arith.negf %26 : vector<2x32xf32>
    %28 = math.exp %27 : vector<2x32xf32>
    %cst_12 = arith.constant 1.000000e+00 : f32
    %29 = vector.broadcast %cst_12 : f32 to vector<2x32xf32>
    %30 = arith.addf %29, %28 : vector<2x32xf32>
    %31 = arith.divf %29, %30 : vector<2x32xf32>
    %32 = arith.mulf %23, %8 : vector<2x32xf32>
    %33 = arith.mulf %17, %25 : vector<2x32xf32>
    %34 = arith.addf %32, %33 : vector<2x32xf32>
    %35 = math.tanh %34 : vector<2x32xf32>
    %36 = arith.mulf %31, %35 : vector<2x32xf32>
    %c0_13 = arith.constant 0 : index
    %c0_14 = arith.constant 0 : index
    %37 = vector.load %arg9[%c0_13, %c0_14] : memref<16x32xf32, #tpu.memory_space<vmem>>, vector<2x32xf32>
    tpu.vector_store %arg9[%c0_13, %c0_14], %36 {strides = array<i32>} : memref<16x32xf32, #tpu.memory_space<vmem>>, vector<2x32xf32>,
    %38 = vector.extract_strided_slice %5 {offsets = [2, 0], sizes = [2, 128], strides = [1, 1]} : vector<16x128xf32> to vector<2x128xf32>
    %cst_15 = arith.constant dense<0.000000e+00> : vector<2x128xf32>
    %39 = tpu.matmul %36, %6, %cst_15 {dimension_numbers = #tpu.dot_dimension_numbers<[1], [0], [0], [1], [0, 0, 1, 1], [], []>} : vector<2x32xf32>, vector<32x128xf32>, vector<2x128xf32> -> vector<2x128xf32>
    %40 = arith.addf %38, %39 : vector<2x128xf32>
    %41 = vector.extract_strided_slice %40 {offsets = [0, 0], sizes = [2, 32], strides = [1, 1]} : vector<2x128xf32> to vector<2x32xf32>
    %42 = arith.negf %41 : vector<2x32xf32>
    %43 = math.exp %42 : vector<2x32xf32>
    %cst_16 = arith.constant 1.000000e+00 : f32
    %44 = vector.broadcast %cst_16 : f32 to vector<2x32xf32>
    %45 = arith.addf %44, %43 : vector<2x32xf32>
    %46 = arith.divf %44, %45 : vector<2x32xf32>
    %47 = vector.extract_strided_slice %40 {offsets = [0, 32], sizes = [2, 32], strides = [1, 1]} : vector<2x128xf32> to vector<2x32xf32>
    %48 = arith.negf %47 : vector<2x32xf32>
    %49 = math.exp %48 : vector<2x32xf32>
    %cst_17 = arith.constant 1.000000e+00 : f32
    %50 = vector.broadcast %cst_17 : f32 to vector<2x32xf32>
    %51 = arith.addf %50, %49 : vector<2x32xf32>
    %52 = arith.divf %50, %51 : vector<2x32xf32>
    %53 = vector.extract_strided_slice %40 {offsets = [0, 64], sizes = [2, 32], strides = [1, 1]} : vector<2x128xf32> to vector<2x32xf32>
    %54 = math.tanh %53 : vector<2x32xf32>
    %55 = vector.extract_strided_slice %40 {offsets = [0, 96], sizes = [2, 32], strides = [1, 1]} : vector<2x128xf32> to vector<2x32xf32>
    %56 = arith.negf %55 : vector<2x32xf32>
    %57 = math.exp %56 : vector<2x32xf32>
    %cst_18 = arith.constant 1.000000e+00 : f32
    %58 = vector.broadcast %cst_18 : f32 to vector<2x32xf32>
    %59 = arith.addf %58, %57 : vector<2x32xf32>
    %60 = arith.divf %58, %59 : vector<2x32xf32>
    %61 = arith.mulf %52, %34 : vector<2x32xf32>
    %62 = arith.mulf %46, %54 : vector<2x32xf32>
    %63 = arith.addf %61, %62 : vector<2x32xf32>
    %64 = math.tanh %63 : vector<2x32xf32>
    %65 = arith.mulf %60, %64 : vector<2x32xf32>
    %c2 = arith.constant 2 : index
    %c0_19 = arith.constant 0 : index
    %66 = vector.load %arg9[%c2, %c0_19] : memref<16x32xf32, #tpu.memory_space<vmem>>, vector<2x32xf32>
    tpu.vector_store %arg9[%c2, %c0_19], %65 {strides = array<i32>} : memref<16x32xf32, #tpu.memory_space<vmem>>, vector<2x32xf32>,
    %67 = vector.extract_strided_slice %5 {offsets = [4, 0], sizes = [2, 128], strides = [1, 1]} : vector<16x128xf32> to vector<2x128xf32>
    %cst_20 = arith.constant dense<0.000000e+00> : vector<2x128xf32>
    %68 = tpu.matmul %65, %6, %cst_20 {dimension_numbers = #tpu.dot_dimension_numbers<[1], [0], [0], [1], [0, 0, 1, 1], [], []>} : vector<2x32xf32>, vector<32x128xf32>, vector<2x128xf32> -> vector<2x128xf32>
    %69 = arith.addf %67, %68 : vector<2x128xf32>
    %70 = vector.extract_strided_slice %69 {offsets = [0, 0], sizes = [2, 32], strides = [1, 1]} : vector<2x128xf32> to vector<2x32xf32>
    %71 = arith.negf %70 : vector<2x32xf32>
    %72 = math.exp %71 : vector<2x32xf32>
    %cst_21 = arith.constant 1.000000e+00 : f32
    %73 = vector.broadcast %cst_21 : f32 to vector<2x32xf32>
    %74 = arith.addf %73, %72 : vector<2x32xf32>
    %75 = arith.divf %73, %74 : vector<2x32xf32>
    %76 = vector.extract_strided_slice %69 {offsets = [0, 32], sizes = [2, 32], strides = [1, 1]} : vector<2x128xf32> to vector<2x32xf32>
    %77 = arith.negf %76 : vector<2x32xf32>
    %78 = math.exp %77 : vector<2x32xf32>
    %cst_22 = arith.constant 1.000000e+00 : f32
    %79 = vector.broadcast %cst_22 : f32 to vector<2x32xf32>
    %80 = arith.addf %79, %78 : vector<2x32xf32>
    %81 = arith.divf %79, %80 : vector<2x32xf32>
    %82 = vector.extract_strided_slice %69 {offsets = [0, 64], sizes = [2, 32], strides = [1, 1]} : vector<2x128xf32> to vector<2x32xf32>
    %83 = math.tanh %82 : vector<2x32xf32>
    %84 = vector.extract_strided_slice %69 {offsets = [0, 96], sizes = [2, 32], strides = [1, 1]} : vector<2x128xf32> to vector<2x32xf32>
    %85 = arith.negf %84 : vector<2x32xf32>
    %86 = math.exp %85 : vector<2x32xf32>
    %cst_23 = arith.constant 1.000000e+00 : f32
    %87 = vector.broadcast %cst_23 : f32 to vector<2x32xf32>
    %88 = arith.addf %87, %86 : vector<2x32xf32>
    %89 = arith.divf %87, %88 : vector<2x32xf32>
    %90 = arith.mulf %81, %63 : vector<2x32xf32>
    %91 = arith.mulf %75, %83 : vector<2x32xf32>
    %92 = arith.addf %90, %91 : vector<2x32xf32>
    %93 = math.tanh %92 : vector<2x32xf32>
    %94 = arith.mulf %89, %93 : vector<2x32xf32>
    %c4 = arith.constant 4 : index
    %c0_24 = arith.constant 0 : index
    %95 = vector.load %arg9[%c4, %c0_24] : memref<16x32xf32, #tpu.memory_space<vmem>>, vector<2x32xf32>
    tpu.vector_store %arg9[%c4, %c0_24], %94 {strides = array<i32>} : memref<16x32xf32, #tpu.memory_space<vmem>>, vector<2x32xf32>,
    %96 = vector.extract_strided_slice %5 {offsets = [6, 0], sizes = [2, 128], strides = [1, 1]} : vector<16x128xf32> to vector<2x128xf32>
    %cst_25 = arith.constant dense<0.000000e+00> : vector<2x128xf32>
    %97 = tpu.matmul %94, %6, %cst_25 {dimension_numbers = #tpu.dot_dimension_numbers<[1], [0], [0], [1], [0, 0, 1, 1], [], []>} : vector<2x32xf32>, vector<32x128xf32>, vector<2x128xf32> -> vector<2x128xf32>
    %98 = arith.addf %96, %97 : vector<2x128xf32>
    %99 = vector.extract_strided_slice %98 {offsets = [0, 0], sizes = [2, 32], strides = [1, 1]} : vector<2x128xf32> to vector<2x32xf32>
    %100 = arith.negf %99 : vector<2x32xf32>
    %101 = math.exp %100 : vector<2x32xf32>
    %cst_26 = arith.constant 1.000000e+00 : f32
    %102 = vector.broadcast %cst_26 : f32 to vector<2x32xf32>
    %103 = arith.addf %102, %101 : vector<2x32xf32>
    %104 = arith.divf %102, %103 : vector<2x32xf32>
    %105 = vector.extract_strided_slice %98 {offsets = [0, 32], sizes = [2, 32], strides = [1, 1]} : vector<2x128xf32> to vector<2x32xf32>
    %106 = arith.negf %105 : vector<2x32xf32>
    %107 = math.exp %106 : vector<2x32xf32>
    %cst_27 = arith.constant 1.000000e+00 : f32
    %108 = vector.broadcast %cst_27 : f32 to vector<2x32xf32>
    %109 = arith.addf %108, %107 : vector<2x32xf32>
    %110 = arith.divf %108, %109 : vector<2x32xf32>
    %111 = vector.extract_strided_slice %98 {offsets = [0, 64], sizes = [2, 32], strides = [1, 1]} : vector<2x128xf32> to vector<2x32xf32>
    %112 = math.tanh %111 : vector<2x32xf32>
    %113 = vector.extract_strided_slice %98 {offsets = [0, 96], sizes = [2, 32], strides = [1, 1]} : vector<2x128xf32> to vector<2x32xf32>
    %114 = arith.negf %113 : vector<2x32xf32>
    %115 = math.exp %114 : vector<2x32xf32>
    %cst_28 = arith.constant 1.000000e+00 : f32
    %116 = vector.broadcast %cst_28 : f32 to vector<2x32xf32>
    %117 = arith.addf %116, %115 : vector<2x32xf32>
    %118 = arith.divf %116, %117 : vector<2x32xf32>
    %119 = arith.mulf %110, %92 : vector<2x32xf32>
    %120 = arith.mulf %104, %112 : vector<2x32xf32>
    %121 = arith.addf %119, %120 : vector<2x32xf32>
    %122 = math.tanh %121 : vector<2x32xf32>
    %123 = arith.mulf %118, %122 : vector<2x32xf32>
    %c6 = arith.constant 6 : index
    %c0_29 = arith.constant 0 : index
    %124 = vector.load %arg9[%c6, %c0_29] : memref<16x32xf32, #tpu.memory_space<vmem>>, vector<2x32xf32>
    tpu.vector_store %arg9[%c6, %c0_29], %123 {strides = array<i32>} : memref<16x32xf32, #tpu.memory_space<vmem>>, vector<2x32xf32>,
    %125 = vector.extract_strided_slice %5 {offsets = [8, 0], sizes = [2, 128], strides = [1, 1]} : vector<16x128xf32> to vector<2x128xf32>
    %cst_30 = arith.constant dense<0.000000e+00> : vector<2x128xf32>
    %126 = tpu.matmul %123, %6, %cst_30 {dimension_numbers = #tpu.dot_dimension_numbers<[1], [0], [0], [1], [0, 0, 1, 1], [], []>} : vector<2x32xf32>, vector<32x128xf32>, vector<2x128xf32> -> vector<2x128xf32>
    %127 = arith.addf %125, %126 : vector<2x128xf32>
    %128 = vector.extract_strided_slice %127 {offsets = [0, 0], sizes = [2, 32], strides = [1, 1]} : vector<2x128xf32> to vector<2x32xf32>
    %129 = arith.negf %128 : vector<2x32xf32>
    %130 = math.exp %129 : vector<2x32xf32>
    %cst_31 = arith.constant 1.000000e+00 : f32
    %131 = vector.broadcast %cst_31 : f32 to vector<2x32xf32>
    %132 = arith.addf %131, %130 : vector<2x32xf32>
    %133 = arith.divf %131, %132 : vector<2x32xf32>
    %134 = vector.extract_strided_slice %127 {offsets = [0, 32], sizes = [2, 32], strides = [1, 1]} : vector<2x128xf32> to vector<2x32xf32>
    %135 = arith.negf %134 : vector<2x32xf32>
    %136 = math.exp %135 : vector<2x32xf32>
    %cst_32 = arith.constant 1.000000e+00 : f32
    %137 = vector.broadcast %cst_32 : f32 to vector<2x32xf32>
    %138 = arith.addf %137, %136 : vector<2x32xf32>
    %139 = arith.divf %137, %138 : vector<2x32xf32>
    %140 = vector.extract_strided_slice %127 {offsets = [0, 64], sizes = [2, 32], strides = [1, 1]} : vector<2x128xf32> to vector<2x32xf32>
    %141 = math.tanh %140 : vector<2x32xf32>
    %142 = vector.extract_strided_slice %127 {offsets = [0, 96], sizes = [2, 32], strides = [1, 1]} : vector<2x128xf32> to vector<2x32xf32>
    %143 = arith.negf %142 : vector<2x32xf32>
    %144 = math.exp %143 : vector<2x32xf32>
    %cst_33 = arith.constant 1.000000e+00 : f32
    %145 = vector.broadcast %cst_33 : f32 to vector<2x32xf32>
    %146 = arith.addf %145, %144 : vector<2x32xf32>
    %147 = arith.divf %145, %146 : vector<2x32xf32>
    %148 = arith.mulf %139, %121 : vector<2x32xf32>
    %149 = arith.mulf %133, %141 : vector<2x32xf32>
    %150 = arith.addf %148, %149 : vector<2x32xf32>
    %151 = math.tanh %150 : vector<2x32xf32>
    %152 = arith.mulf %147, %151 : vector<2x32xf32>
    %c8 = arith.constant 8 : index
    %c0_34 = arith.constant 0 : index
    %153 = vector.load %arg9[%c8, %c0_34] : memref<16x32xf32, #tpu.memory_space<vmem>>, vector<2x32xf32>
    tpu.vector_store %arg9[%c8, %c0_34], %152 {strides = array<i32>} : memref<16x32xf32, #tpu.memory_space<vmem>>, vector<2x32xf32>,
    %154 = vector.extract_strided_slice %5 {offsets = [10, 0], sizes = [2, 128], strides = [1, 1]} : vector<16x128xf32> to vector<2x128xf32>
    %cst_35 = arith.constant dense<0.000000e+00> : vector<2x128xf32>
    %155 = tpu.matmul %152, %6, %cst_35 {dimension_numbers = #tpu.dot_dimension_numbers<[1], [0], [0], [1], [0, 0, 1, 1], [], []>} : vector<2x32xf32>, vector<32x128xf32>, vector<2x128xf32> -> vector<2x128xf32>
    %156 = arith.addf %154, %155 : vector<2x128xf32>
    %157 = vector.extract_strided_slice %156 {offsets = [0, 0], sizes = [2, 32], strides = [1, 1]} : vector<2x128xf32> to vector<2x32xf32>
    %158 = arith.negf %157 : vector<2x32xf32>
    %159 = math.exp %158 : vector<2x32xf32>
    %cst_36 = arith.constant 1.000000e+00 : f32
    %160 = vector.broadcast %cst_36 : f32 to vector<2x32xf32>
    %161 = arith.addf %160, %159 : vector<2x32xf32>
    %162 = arith.divf %160, %161 : vector<2x32xf32>
    %163 = vector.extract_strided_slice %156 {offsets = [0, 32], sizes = [2, 32], strides = [1, 1]} : vector<2x128xf32> to vector<2x32xf32>
    %164 = arith.negf %163 : vector<2x32xf32>
    %165 = math.exp %164 : vector<2x32xf32>
    %cst_37 = arith.constant 1.000000e+00 : f32
    %166 = vector.broadcast %cst_37 : f32 to vector<2x32xf32>
    %167 = arith.addf %166, %165 : vector<2x32xf32>
    %168 = arith.divf %166, %167 : vector<2x32xf32>
    %169 = vector.extract_strided_slice %156 {offsets = [0, 64], sizes = [2, 32], strides = [1, 1]} : vector<2x128xf32> to vector<2x32xf32>
    %170 = math.tanh %169 : vector<2x32xf32>
    %171 = vector.extract_strided_slice %156 {offsets = [0, 96], sizes = [2, 32], strides = [1, 1]} : vector<2x128xf32> to vector<2x32xf32>
    %172 = arith.negf %171 : vector<2x32xf32>
    %173 = math.exp %172 : vector<2x32xf32>
    %cst_38 = arith.constant 1.000000e+00 : f32
    %174 = vector.broadcast %cst_38 : f32 to vector<2x32xf32>
    %175 = arith.addf %174, %173 : vector<2x32xf32>
    %176 = arith.divf %174, %175 : vector<2x32xf32>
    %177 = arith.mulf %168, %150 : vector<2x32xf32>
    %178 = arith.mulf %162, %170 : vector<2x32xf32>
    %179 = arith.addf %177, %178 : vector<2x32xf32>
    %180 = math.tanh %179 : vector<2x32xf32>
    %181 = arith.mulf %176, %180 : vector<2x32xf32>
    %c10 = arith.constant 10 : index
    %c0_39 = arith.constant 0 : index
    %182 = vector.load %arg9[%c10, %c0_39] : memref<16x32xf32, #tpu.memory_space<vmem>>, vector<2x32xf32>
    tpu.vector_store %arg9[%c10, %c0_39], %181 {strides = array<i32>} : memref<16x32xf32, #tpu.memory_space<vmem>>, vector<2x32xf32>,
    %183 = vector.extract_strided_slice %5 {offsets = [12, 0], sizes = [2, 128], strides = [1, 1]} : vector<16x128xf32> to vector<2x128xf32>
    %cst_40 = arith.constant dense<0.000000e+00> : vector<2x128xf32>
    %184 = tpu.matmul %181, %6, %cst_40 {dimension_numbers = #tpu.dot_dimension_numbers<[1], [0], [0], [1], [0, 0, 1, 1], [], []>} : vector<2x32xf32>, vector<32x128xf32>, vector<2x128xf32> -> vector<2x128xf32>
    %185 = arith.addf %183, %184 : vector<2x128xf32>
    %186 = vector.extract_strided_slice %185 {offsets = [0, 0], sizes = [2, 32], strides = [1, 1]} : vector<2x128xf32> to vector<2x32xf32>
    %187 = arith.negf %186 : vector<2x32xf32>
    %188 = math.exp %187 : vector<2x32xf32>
    %cst_41 = arith.constant 1.000000e+00 : f32
    %189 = vector.broadcast %cst_41 : f32 to vector<2x32xf32>
    %190 = arith.addf %189, %188 : vector<2x32xf32>
    %191 = arith.divf %189, %190 : vector<2x32xf32>
    %192 = vector.extract_strided_slice %185 {offsets = [0, 32], sizes = [2, 32], strides = [1, 1]} : vector<2x128xf32> to vector<2x32xf32>
    %193 = arith.negf %192 : vector<2x32xf32>
    %194 = math.exp %193 : vector<2x32xf32>
    %cst_42 = arith.constant 1.000000e+00 : f32
    %195 = vector.broadcast %cst_42 : f32 to vector<2x32xf32>
    %196 = arith.addf %195, %194 : vector<2x32xf32>
    %197 = arith.divf %195, %196 : vector<2x32xf32>
    %198 = vector.extract_strided_slice %185 {offsets = [0, 64], sizes = [2, 32], strides = [1, 1]} : vector<2x128xf32> to vector<2x32xf32>
    %199 = math.tanh %198 : vector<2x32xf32>
    %200 = vector.extract_strided_slice %185 {offsets = [0, 96], sizes = [2, 32], strides = [1, 1]} : vector<2x128xf32> to vector<2x32xf32>
    %201 = arith.negf %200 : vector<2x32xf32>
    %202 = math.exp %201 : vector<2x32xf32>
    %cst_43 = arith.constant 1.000000e+00 : f32
    %203 = vector.broadcast %cst_43 : f32 to vector<2x32xf32>
    %204 = arith.addf %203, %202 : vector<2x32xf32>
    %205 = arith.divf %203, %204 : vector<2x32xf32>
    %206 = arith.mulf %197, %179 : vector<2x32xf32>
    %207 = arith.mulf %191, %199 : vector<2x32xf32>
    %208 = arith.addf %206, %207 : vector<2x32xf32>
    %209 = math.tanh %208 : vector<2x32xf32>
    %210 = arith.mulf %205, %209 : vector<2x32xf32>
    %c12 = arith.constant 12 : index
    %c0_44 = arith.constant 0 : index
    %211 = vector.load %arg9[%c12, %c0_44] : memref<16x32xf32, #tpu.memory_space<vmem>>, vector<2x32xf32>
    tpu.vector_store %arg9[%c12, %c0_44], %210 {strides = array<i32>} : memref<16x32xf32, #tpu.memory_space<vmem>>, vector<2x32xf32>,
    %212 = vector.extract_strided_slice %5 {offsets = [14, 0], sizes = [2, 128], strides = [1, 1]} : vector<16x128xf32> to vector<2x128xf32>
    %cst_45 = arith.constant dense<0.000000e+00> : vector<2x128xf32>
    %213 = tpu.matmul %210, %6, %cst_45 {dimension_numbers = #tpu.dot_dimension_numbers<[1], [0], [0], [1], [0, 0, 1, 1], [], []>} : vector<2x32xf32>, vector<32x128xf32>, vector<2x128xf32> -> vector<2x128xf32>
    %214 = arith.addf %212, %213 : vector<2x128xf32>
    %215 = vector.extract_strided_slice %214 {offsets = [0, 0], sizes = [2, 32], strides = [1, 1]} : vector<2x128xf32> to vector<2x32xf32>
    %216 = arith.negf %215 : vector<2x32xf32>
    %217 = math.exp %216 : vector<2x32xf32>
    %cst_46 = arith.constant 1.000000e+00 : f32
    %218 = vector.broadcast %cst_46 : f32 to vector<2x32xf32>
    %219 = arith.addf %218, %217 : vector<2x32xf32>
    %220 = arith.divf %218, %219 : vector<2x32xf32>
    %221 = vector.extract_strided_slice %214 {offsets = [0, 32], sizes = [2, 32], strides = [1, 1]} : vector<2x128xf32> to vector<2x32xf32>
    %222 = arith.negf %221 : vector<2x32xf32>
    %223 = math.exp %222 : vector<2x32xf32>
    %cst_47 = arith.constant 1.000000e+00 : f32
    %224 = vector.broadcast %cst_47 : f32 to vector<2x32xf32>
    %225 = arith.addf %224, %223 : vector<2x32xf32>
    %226 = arith.divf %224, %225 : vector<2x32xf32>
    %227 = vector.extract_strided_slice %214 {offsets = [0, 64], sizes = [2, 32], strides = [1, 1]} : vector<2x128xf32> to vector<2x32xf32>
    %228 = math.tanh %227 : vector<2x32xf32>
    %229 = vector.extract_strided_slice %214 {offsets = [0, 96], sizes = [2, 32], strides = [1, 1]} : vector<2x128xf32> to vector<2x32xf32>
    %230 = arith.negf %229 : vector<2x32xf32>
    %231 = math.exp %230 : vector<2x32xf32>
    %cst_48 = arith.constant 1.000000e+00 : f32
    %232 = vector.broadcast %cst_48 : f32 to vector<2x32xf32>
    %233 = arith.addf %232, %231 : vector<2x32xf32>
    %234 = arith.divf %232, %233 : vector<2x32xf32>
    %235 = arith.mulf %226, %208 : vector<2x32xf32>
    %236 = arith.mulf %220, %228 : vector<2x32xf32>
    %237 = arith.addf %235, %236 : vector<2x32xf32>
    %238 = math.tanh %237 : vector<2x32xf32>
    %239 = arith.mulf %234, %238 : vector<2x32xf32>
    %c14 = arith.constant 14 : index
    %c0_49 = arith.constant 0 : index
    %240 = vector.load %arg9[%c14, %c0_49] : memref<16x32xf32, #tpu.memory_space<vmem>>, vector<2x32xf32>
    tpu.vector_store %arg9[%c14, %c0_49], %239 {strides = array<i32>} : memref<16x32xf32, #tpu.memory_space<vmem>>, vector<2x32xf32>,
    %c0_50 = arith.constant 0 : index
    %c0_51 = arith.constant 0 : index
    %241 = vector.load %arg7[%c0_50, %c0_51] : memref<2x32xf32, #tpu.memory_space<vmem>>, vector<2x32xf32>
    tpu.vector_store %arg7[%c0_50, %c0_51], %239 {strides = array<i32>} : memref<2x32xf32, #tpu.memory_space<vmem>>, vector<2x32xf32>,
    %c0_52 = arith.constant 0 : index
    %c0_53 = arith.constant 0 : index
    %242 = vector.load %arg8[%c0_52, %c0_53] : memref<2x32xf32, #tpu.memory_space<vmem>>, vector<2x32xf32>
    tpu.vector_store %arg8[%c0_52, %c0_53], %237 {strides = array<i32>} : memref<2x32xf32, #tpu.memory_space<vmem>>, vector<2x32xf32>,
    %c0_54 = arith.constant 0 : index
    %c0_55 = arith.constant 0 : index
    %243 = vector.load %arg9[%c0_54, %c0_55] : memref<16x32xf32, #tpu.memory_space<vmem>>, vector<16x32xf32>
    %c0_56 = arith.constant 0 : index
    %c0_57 = arith.constant 0 : index
    %244 = vector.load %arg4[%c0_56, %c0_57] : memref<32x6xf32, #tpu.memory_space<vmem>>, vector<32x6xf32>
    %cst_58 = arith.constant dense<0.000000e+00> : vector<16x6xf32>
    %245 = tpu.matmul %243, %244, %cst_58 {dimension_numbers = #tpu.dot_dimension_numbers<[1], [0], [0], [1], [0, 0, 1, 1], [], []>} : vector<16x32xf32>, vector<32x6xf32>, vector<16x6xf32> -> vector<16x6xf32>
    %c0_59 = arith.constant 0 : index
    %c0_60 = arith.constant 0 : index
    %246 = vector.load %arg5[%c0_59, %c0_60] : memref<1x6xf32, #tpu.memory_space<vmem>>, vector<1x6xf32>
    %247 = vector.broadcast %246 : vector<1x6xf32> to vector<16x6xf32>
    %248 = arith.addf %245, %247 : vector<16x6xf32>
    %c0_61 = arith.constant 0 : index
    %c0_62 = arith.constant 0 : index
    %249 = vector.load %arg6[%c0_61, %c0_62] : memref<16x6xf32, #tpu.memory_space<vmem>>, vector<16x6xf32>
    tpu.vector_store %arg6[%c0_61, %c0_62], %248 {strides = array<i32>} : memref<16x6xf32, #tpu.memory_space<vmem>>, vector<16x6xf32>,
    return
  }
}

</mosaic_0001>

<bundles_post_ra>
// kernel: tpu_custom_call.1
= control target key start
LH: loop header
LB: loop body
LE: loop exit
PB: predicated region body
PF: predicated region fallthrough
CT: control target
= control target key end

     0   :  { %14 = vsyncpa [#allocation4], 0  ;;  %s1188_s0 = inlined_call_operand.hbm [shape: f32[16,16], index: 0, kind: input, shape index: {}]   ;;  %s1189_s1 = inlined_call_operand.hbm [shape: f32[16,128], index: 1, kind: input, shape index: {}]   ;;  %s1190_s2 = inlined_call_operand.vmem [shape: f32[32,128], index: 2, kind: input, shape index: {}]   ;;  %s1191_s3 = inlined_call_operand.vmem [shape: f32[1,128], index: 3, kind: input, shape index: {}]   ;;  %s1192_s4 = inlined_call_operand.vmem [shape: f32[32,6], index: 4, kind: input, shape index: {}]   ;;  %s1193_s5 = inlined_call_operand.vmem [shape: f32[1,6], index: 5, kind: input, shape index: {}]   ;;  %s1194_s6 = inlined_call_operand.vmem [shape: f32[16,6], index: 6, kind: output, shape index: {0}]   ;;  %s1195_s7 = inlined_call_operand.hbm [shape: f32[2,32], index: 7, kind: output, shape index: {1}]   ;;  %s1196_s8 = inlined_call_operand.hbm [shape: f32[2,32], index: 8, kind: output, shape index: {2}]  }
   0x1   :  { %15 = vsyncpa [#allocation7], 0 }
   0x2   :  { %16 = vsyncpa [#allocation5], 0 }
   0x3   :  { %17 = vsyncpa [#allocation10], 0  ;;  %s22_s29 = sshll.u32 %s1188_s0, 4  ;;  %s967_s30 = smov [#allocation3]   ;;  %s23_s29 = int_to_ptr.hbm [resolvable:$true] %s22_s29 }
   0x4   :  { %s24_s9 = sshll.u32 %s967_s30, 4  ;;  %s35_s12 = sshll.u32 %s1189_s1, 4  ;;  %s25_s9 = int_to_ptr.vmem [resolvable:$true] %s24_s9  ;;  %s36_s12 = int_to_ptr.hbm [resolvable:$true] %s35_s12 }
   0x5   :  { %s968_s13 = smov 128   ;;  %s969_s14 = smov 8  }
   0x6   :  { %30 = dma.hbm_to_vmem [thread:$0]  %s23_s29, 256, %s25_s9, [#allocation4], %s968_s13, %s968_s13, %s969_s14  }
   0x7   :  { %s970_s15 = smov [#allocation6]  }
   0x8   :  { %s37_s16 = sshll.u32 %s970_s15, 4  ;;  %s38_s16 = int_to_ptr.vmem [resolvable:$true] %s37_s16 }
   0x9   :  { %43 = dma.hbm_to_vmem [thread:$0]  %s36_s12, 256, %s38_s16, [#allocation7], %s968_s13, %s968_s13, %s969_s14  }
   0xa   :  { %959 = dma.done.wait [#allocation4], 256  }
   0xb   :  { %960 = vsyncadd [#allocation4], 4294967040 }
   0xc   :  { %961 = dma.done.wait [#allocation7], 256  }
   0xd   :  { %962 = vsyncadd [#allocation7], 4294967040  ;;  %v1031_v0 = vld [vmem:[%s1190_s2 + $0x18] sm:$0xff]  ;;  %v63_v1 = vld [vmem:[#allocation6 + $0x8] sm:$0xff]  ;;  %vm68_vm0 = vcmask 130048   ;;  %v971_v7 = vmov 0.0  }
   0xe   :  { %v1036_v2 = vld [vmem:[%s1190_s2 + $0x10] sm:$0xff]  ;;  %118 = vmatpush.msra.mxu1 %v1031_v0  ;;  %89 = vmatpush.msra.mxu0 %v63_v1  ;;  %v62_v3 = vld [vmem:[#allocation6] sm:$0xff]  ;;  %v1042_v5 = vld [vmem:[%s1190_s2 + $0x8] sm:$0xff]  ;;  %s972_s24 = smov 64   ;;  %vm168_vm5 = vcmask 254976   ;;  %vm102_vm6 = vcmask 261120  }
   0xf   :  { %v60_v4 = vld [vmem:[#allocation3] sm:$0xff]  ;;  %184 = vmatpush.msra.mxu3 %v1031_v0  ;;  %409 = vmatpush.msra.mxu2 %v1031_v0  ;;  %v1051_v6 = vld [vmem:[%s1190_s2] sm:$0xff]  ;;  %s974_s25 = smov 96   ;;  %s739_s15 = sshll.u32 %s1195_s7, 4  ;;  %s740_s15 = int_to_ptr.hbm [resolvable:$true] %s739_s15 }
  0x10   :  { %119 = vmatpush.msra.mxu1 %v1036_v2  ;;  %90 = vmatpush.msra.mxu0 %v62_v3  ;;  %v1080_v8 = vld [vmem:[%s1191_s3] ss:$0 sm:$0xff]  ;;  %s973_s3 = smov 32   ;;  %s976_s16 = smov [#allocation9]  }
  0x11   :  { %768 = vmatmul.msk.f32.vlgmr.msra.gmra.mxu0 %vm68_vm0, %v60_v4  ;;  %185 = vmatpush.msra.mxu3 %v1036_v2  ;;  %s748_s0 = sshll.u32 %s976_s16, 4  ;;  %s750_s1 = sshll.u32 %s1196_s8, 4  ;;  %s749_s0 = int_to_ptr.vmem [resolvable:$true] %s748_s0  ;;  %s751_s1 = int_to_ptr.hbm [resolvable:$true] %s750_s1 }
  0x12   :  { %120 = vmatpush.msra.mxu1 %v1042_v5  ;;  %410 = vmatpush.msra.mxu2 %v1036_v2 }
  0x13   :  { %186 = vmatpush.msra.mxu3 %v1042_v5  ;;  %551 = vmatpush.msrb.mxu0 %v1031_v0 }
  0x14   :  { %121 = vmatpush.msra.mxu1 %v1051_v6  ;;  %411 = vmatpush.msra.mxu2 %v1042_v5 }
  0x15   :  { %122 = vmatmul.f32.vlgmr.msra.gmra.mxu1 %v971_v7  ;;  %187 = vmatpush.msra.mxu3 %v1051_v6 }
  0x16   :  { %334 = vmatpush.msrb.mxu1 %v1031_v0  ;;  %412 = vmatpush.msra.mxu2 %v1051_v6 }
  0x17   :  { %259 = vmatpush.msrb.mxu3 %v1031_v0  ;;  %552 = vmatpush.msrb.mxu0 %v1036_v2 }
  0x18   :  { %335 = vmatpush.msrb.mxu1 %v1036_v2 }
  0x19   :  { %260 = vmatpush.msrb.mxu3 %v1036_v2  ;;  %553 = vmatpush.msrb.mxu0 %v1042_v5 }
  0x1a   :  { %336 = vmatpush.msrb.mxu1 %v1042_v5 }
  0x1b   :  { %261 = vmatpush.msrb.mxu3 %v1042_v5  ;;  %554 = vmatpush.msrb.mxu0 %v1051_v6 }
  0x1c   :  { %337 = vmatpush.msrb.mxu1 %v1051_v6 }
  0x1d   :  { %262 = vmatpush.msrb.mxu3 %v1051_v6 }
  0x1e   :  { %625 = vmatpush.msra.mxu1 %v1031_v0 }
  0x20   :  { %626 = vmatpush.msra.mxu1 %v1036_v2 }
  0x22   :  { %627 = vmatpush.msra.mxu1 %v1042_v5 }
  0x24   :  { %628 = vmatpush.msra.mxu1 %v1051_v6 }
  0x8e   :  { %v92_v9 = vpop.f32.mrf.mxu0 }
  0x8f   :  { %v1083_v10 = vadd.f32 %v1080_v8, %v92_v9 }
  0x92   :  { %v123_v11 = vpop.f32.mrf.mxu1 }
  0x93   :  { %v126_v12 = vadd.f32 %v123_v11, %v1083_v10 }
  0x95   :  { %799 = vtanh.f32 %v126_v12  ;;  %v770_v14 = vmul.f32 -1.442695, %v126_v12 }
  0x97   :  { %801 = vpow2.f32 %v770_v14 }
  0x9b   :  { %v800_v13 = vpop.eup %799 }
  0x9c   :  { %149 = vrot.lane.b32.xlu0 %v800_v13, %s972_s24 }
  0x9d   :  { %v802_v15 = vpop.eup %801 }
  0x9e   :  { %v130_v16 = vadd.f32 1.0, %v802_v15 }
  0xa0   :  { %803 = vrcp.f32 %v130_v16  ;;  %v142_v22 = vand.u32 2147483648, %v130_v16  ;;  %vm136_vm2 = vweird.f32 %v130_v16  ;;  %v140_v23 = vand.u32 2147483647, %v130_v16 }
  0xa2   :  { %v143_v25 = vor.u32 1.1754944e-38, %v142_v22  ;;  %vm141_vm4 = vcmp.eq.f32.partialorder %v140_v23, 8.507059e+37 }
  0xa6   :  { %v804_v17 = vpop.eup %803 }
  0xa7   :  { %v132_v18 = vmul.f32 %v804_v17, %v130_v16  ;;  %vm137_vm1 = vweird.f32 %v804_v17 }
  0xa8   :  { %vm138_vm3 = vmor %vm136_vm2, %vm137_vm1 }
  0xa9   :  { %v133_v19 = vsub.f32 1.0, %v132_v18 }
  0xab   :  { %v134_v20 = vmul.f32 %v804_v17, %v133_v19 }
  0xad   :  { %v135_v21 = vadd.f32 %v804_v17, %v134_v20 }
  0xaf   :  { %v139_v24 = vsel %vm138_vm3, %v804_v17, %v135_v21 }
  0xb0   :  { %v144_v27 = vsel %vm141_vm4, %v143_v25, %v139_v24 }
  0xb1   :  { %v147_v29 = vmul.f32 0.0, %v144_v27 }
 0x10e   :  { %v150_v26 = vpop.permute.xlu0 %149 }
 0x10f   :  { %v152_v28 = vmul.f32 %v150_v26, %v144_v27 }
 0x111   :  { %154 = vrot.lane.b32.xlu0 %v152_v28, %s973_s3 }
 0x183   :  { %v155_v30 = vpop.permute.xlu0 %154 }
 0x184   :  { %v157_v31 = vadd.f32 %v155_v30, %v147_v29 }
 0x186   :  { %805 = vtanh.f32 %v157_v31  ;;  %v217_v55 = vrot.slane %v157_v31, 6 }
 0x18c   :  { %v806_v32 = vpop.eup %805 }
 0x18d   :  { %160 = vrot.lane.b32.xlu1 %v806_v32, %s972_s24 }
 0x1ff   :  { %v161_v33 = vpop.permute.xlu1 %160 }
 0x200   :  { %v163_v34 = vmul.f32 %v161_v33, %v144_v27 }
 0x202   :  { %165 = vrot.lane.b32.xlu1 %v163_v34, %s973_s3 }
 0x274   :  { %v166_v35 = vpop.permute.xlu1 %165 }
 0x275   :  { %169 = vst.msk [vmem:[#allocation2] sm:$0x3] %vm168_vm5, %v166_v35  ;;  %771 = vmatmul.msk.f32.vlgmr.msra.gmra.mxu3 %vm102_vm6, %v166_v35 }
 0x276   :  { %477 = vmatpush.msra.mxu3 %v1031_v0 }
 0x278   :  { %478 = vmatpush.msra.mxu3 %v1036_v2 }
 0x27a   :  { %479 = vmatpush.msra.mxu3 %v1042_v5 }
 0x27c   :  { %480 = vmatpush.msra.mxu3 %v1051_v6 }
 0x2f8   :  { %v189_v36 = vpop.f32.mrf.mxu3 }
 0x2f9   :  { %v193_v37 = vrot.slane %v189_v36, 6 }
 0x2fb   :  { %v195_v38 = vadd.f32 %v193_v37, %v1083_v10 }
 0x2fd   :  { %807 = vtanh.f32 %v195_v38  ;;  %v772_v40 = vmul.f32 -1.442695, %v195_v38 }
 0x2ff   :  { %809 = vpow2.f32 %v772_v40 }
 0x303   :  { %v808_v39 = vpop.eup %807 }
 0x304   :  { %221 = vrot.lane.b32.xlu2 %v808_v39, %s972_s24 }
 0x305   :  { %v810_v41 = vpop.eup %809 }
 0x306   :  { %v199_v42 = vadd.f32 1.0, %v810_v41 }
 0x308   :  { %811 = vrcp.f32 %v199_v42  ;;  %v211_v48 = vand.u32 2147483648, %v199_v42  ;;  %vm205_vm8 = vweird.f32 %v199_v42  ;;  %v209_v49 = vand.u32 2147483647, %v199_v42 }
 0x30a   :  { %v212_v51 = vor.u32 1.1754944e-38, %v211_v48  ;;  %vm210_vm10 = vcmp.eq.f32.partialorder %v209_v49, 8.507059e+37 }
 0x30e   :  { %v812_v43 = vpop.eup %811 }
 0x30f   :  { %v201_v44 = vmul.f32 %v812_v43, %v199_v42  ;;  %vm206_vm7 = vweird.f32 %v812_v43 }
 0x310   :  { %vm207_vm9 = vmor %vm205_vm8, %vm206_vm7 }
 0x311   :  { %v202_v45 = vsub.f32 1.0, %v201_v44 }
 0x313   :  { %v203_v46 = vmul.f32 %v812_v43, %v202_v45 }
 0x315   :  { %v204_v47 = vadd.f32 %v812_v43, %v203_v46 }
 0x317   :  { %v208_v50 = vsel %vm207_vm9, %v812_v43, %v204_v47 }
 0x318   :  { %v213_v53 = vsel %vm210_vm10, %v212_v51, %v208_v50 }
 0x319   :  { %v219_v56 = vmul.f32 %v217_v55, %v213_v53 }
 0x35e   :  { %v222_v52 = vpop.permute.xlu2 %221 }
 0x35f   :  { %v224_v54 = vmul.f32 %v222_v52, %v213_v53 }
 0x361   :  { %226 = vrot.lane.b32.xlu2 %v224_v54, %s973_s3 }
 0x3bb   :  { %v227_v57 = vpop.permute.xlu2 %226 }
 0x3bc   :  { %v229_v58 = vadd.f32 %v227_v57, %v219_v56  ;;  %v61_v56 = vld [vmem:[#allocation3 + $0x8] sm:$0xff] }
 0x3bd   :  { %769 = vmatmul.msk.f32.gmra.mxu0 %vm68_vm0, %v61_v56 }
 0x3be   :  { %813 = vtanh.f32 %v229_v58  ;;  %v292_v21 = vrot.slane %v229_v58, 6 }
 0x3c4   :  { %v814_v59 = vpop.eup %813 }
 0x3c5   :  { %232 = vrot.lane.b32.xlu0 %v814_v59, %s972_s24 }
 0x437   :  { %v233_v60 = vpop.permute.xlu0 %232 }
 0x438   :  { %v1100_v61 = vmul.f32 %v233_v60, %v213_v53 }
 0x43a   :  { %v242_v62 = vrot.slane %v1100_v61, 2  ;;  %v95_v58 = vpop.f32.mrf.mxu0 }
 0x43b   :  { %v1125_v59 = vadd.f32 %v1080_v8, %v95_v58 }
 0x43c   :  { %243 = vrot.lane.b32.xlu1 %v242_v62, %s973_s3 }
 0x4ae   :  { %v244_v63 = vpop.permute.xlu1 %243 }
 0x4af   :  { %773 = vmatmul.msk.f32.vlgmr.msrb.gmra.mxu3 %vm102_vm6, %v244_v63 }
 0x532   :  { %v264_v0 = vpop.f32.mrf.mxu3 }
 0x533   :  { %v268_v1 = vrot.slane %v264_v0, 4 }
 0x535   :  { %v270_v2 = vadd.f32 %v268_v1, %v1083_v10 }
 0x537   :  { %815 = vtanh.f32 %v270_v2  ;;  %v774_v4 = vmul.f32 -1.442695, %v270_v2 }
 0x539   :  { %817 = vpow2.f32 %v774_v4 }
 0x53d   :  { %v816_v3 = vpop.eup %815 }
 0x53e   :  { %296 = vrot.lane.b32.xlu2 %v816_v3, %s972_s24 }
 0x53f   :  { %v818_v5 = vpop.eup %817 }
 0x540   :  { %v274_v6 = vadd.f32 1.0, %v818_v5 }
 0x542   :  { %819 = vrcp.f32 %v274_v6  ;;  %v286_v14 = vand.u32 2147483648, %v274_v6  ;;  %vm280_vm12 = vweird.f32 %v274_v6  ;;  %v284_v15 = vand.u32 2147483647, %v274_v6 }
 0x544   :  { %v287_v17 = vor.u32 1.1754944e-38, %v286_v14  ;;  %vm285_vm14 = vcmp.eq.f32.partialorder %v284_v15, 8.507059e+37 }
 0x548   :  { %v820_v7 = vpop.eup %819 }
 0x549   :  { %v276_v9 = vmul.f32 %v820_v7, %v274_v6  ;;  %vm281_vm11 = vweird.f32 %v820_v7 }
 0x54a   :  { %vm282_vm13 = vmor %vm280_vm12, %vm281_vm11 }
 0x54b   :  { %v277_v11 = vsub.f32 1.0, %v276_v9 }
 0x54d   :  { %v278_v12 = vmul.f32 %v820_v7, %v277_v11 }
 0x54f   :  { %v279_v13 = vadd.f32 %v820_v7, %v278_v12 }
 0x551   :  { %v283_v16 = vsel %vm282_vm13, %v820_v7, %v279_v13 }
 0x552   :  { %v288_v19 = vsel %vm285_vm14, %v287_v17, %v283_v16 }
 0x553   :  { %v294_v22 = vmul.f32 %v292_v21, %v288_v19 }
 0x598   :  { %v297_v18 = vpop.permute.xlu2 %296 }
 0x599   :  { %v299_v20 = vmul.f32 %v297_v18, %v288_v19 }
 0x59b   :  { %301 = vrot.lane.b32.xlu0 %v299_v20, %s973_s3 }
 0x60d   :  { %v302_v23 = vpop.permute.xlu0 %301 }
 0x60e   :  { %v304_v24 = vadd.f32 %v302_v23, %v294_v22 }
 0x610   :  { %821 = vtanh.f32 %v304_v24  ;;  %v367_v48 = vrot.slane %v304_v24, 6 }
 0x616   :  { %v822_v25 = vpop.eup %821 }
 0x617   :  { %307 = vrot.lane.b32.xlu1 %v822_v25, %s972_s24 }
 0x689   :  { %v308_v26 = vpop.permute.xlu1 %307 }
 0x68a   :  { %v1109_v27 = vmul.f32 %v308_v26, %v288_v19 }
 0x68c   :  { %v317_v28 = vrot.slane %v1109_v27, 4 }
 0x68e   :  { %318 = vrot.lane.b32.xlu2 %v317_v28, %s973_s3 }
 0x6e8   :  { %v319_v29 = vpop.permute.xlu2 %318 }
 0x6e9   :  { %775 = vmatmul.msk.f32.vlgmr.msrb.gmra.mxu1 %vm102_vm6, %v319_v29 }
 0x766   :  { %v339_v30 = vpop.f32.mrf.mxu1 }
 0x767   :  { %v343_v31 = vrot.slane %v339_v30, 2 }
 0x769   :  { %v345_v32 = vadd.f32 %v343_v31, %v1083_v10 }
 0x76b   :  { %823 = vtanh.f32 %v345_v32  ;;  %v776_v34 = vmul.f32 -1.442695, %v345_v32 }
 0x76d   :  { %825 = vpow2.f32 %v776_v34 }
 0x771   :  { %v824_v33 = vpop.eup %823 }
 0x772   :  { %371 = vrot.lane.b32.xlu0 %v824_v33, %s972_s24 }
 0x773   :  { %v826_v35 = vpop.eup %825 }
 0x774   :  { %v349_v36 = vadd.f32 1.0, %v826_v35 }
 0x776   :  { %827 = vrcp.f32 %v349_v36  ;;  %v361_v42 = vand.u32 2147483648, %v349_v36  ;;  %vm355_vm1 = vweird.f32 %v349_v36  ;;  %v359_v43 = vand.u32 2147483647, %v349_v36 }
 0x778   :  { %v362_v44 = vor.u32 1.1754944e-38, %v361_v42  ;;  %vm360_vm3 = vcmp.eq.f32.partialorder %v359_v43, 8.507059e+37 }
 0x77c   :  { %v828_v37 = vpop.eup %827 }
 0x77d   :  { %v351_v38 = vmul.f32 %v828_v37, %v349_v36  ;;  %vm356_vm15 = vweird.f32 %v828_v37 }
 0x77e   :  { %vm357_vm2 = vmor %vm355_vm1, %vm356_vm15 }
 0x77f   :  { %v352_v39 = vsub.f32 1.0, %v351_v38 }
 0x781   :  { %v353_v40 = vmul.f32 %v828_v37, %v352_v39 }
 0x783   :  { %v354_v41 = vadd.f32 %v828_v37, %v353_v40 }
 0x785   :  { %v358_v10 = vsel %vm357_vm2, %v828_v37, %v354_v41 }
 0x786   :  { %v363_v46 = vsel %vm360_vm3, %v362_v44, %v358_v10 }
 0x787   :  { %v369_v49 = vmul.f32 %v367_v48, %v363_v46 }
 0x7e4   :  { %v372_v45 = vpop.permute.xlu0 %371 }
 0x7e5   :  { %v374_v47 = vmul.f32 %v372_v45, %v363_v46 }
 0x7e7   :  { %376 = vrot.lane.b32.xlu1 %v374_v47, %s973_s3 }
 0x859   :  { %v377_v50 = vpop.permute.xlu1 %376 }
 0x85a   :  { %v379_v51 = vadd.f32 %v377_v50, %v369_v49 }
 0x85c   :  { %829 = vtanh.f32 %v379_v51  ;;  %v439_v16 = vrot.slane %v379_v51, 6 }
 0x862   :  { %v830_v52 = vpop.eup %829 }
 0x863   :  { %382 = vrot.lane.b32.xlu2 %v830_v52, %s972_s24 }
 0x8bd   :  { %v383_v53 = vpop.permute.xlu2 %382 }
 0x8be   :  { %v1118_v54 = vmul.f32 %v383_v53, %v363_v46 }
 0x8c0   :  { %v392_v55 = vrot.slane %v1118_v54, 6 }
 0x8c2   :  { %393 = vrot.lane.b32.xlu0 %v392_v55, %s973_s3 }
 0x934   :  { %v394_v57 = vpop.permute.xlu0 %393 }
 0x935   :  { %777 = vmatmul.msk.f32.vlgmr.msra.gmra.mxu2 %vm102_vm6, %v394_v57 }
 0x9b8   :  { %v414_v60 = vpop.f32.mrf.mxu2 }
 0x9b9   :  { %v417_v62 = vadd.f32 %v414_v60, %v1125_v59 }
 0x9bb   :  { %831 = vtanh.f32 %v417_v62  ;;  %v778_v0 = vmul.f32 -1.442695, %v417_v62 }
 0x9bd   :  { %833 = vpow2.f32 %v778_v0 }
 0x9c1   :  { %v832_v63 = vpop.eup %831 }
 0x9c2   :  { %443 = vrot.lane.b32.xlu1 %v832_v63, %s972_s24 }
 0x9c3   :  { %v834_v1 = vpop.eup %833 }
 0x9c4   :  { %v421_v2 = vadd.f32 1.0, %v834_v1 }
 0x9c6   :  { %835 = vrcp.f32 %v421_v2  ;;  %v433_v8 = vand.u32 2147483648, %v421_v2  ;;  %vm427_vm4 = vweird.f32 %v421_v2  ;;  %v431_v9 = vand.u32 2147483647, %v421_v2 }
 0x9c8   :  { %v434_v12 = vor.u32 1.1754944e-38, %v433_v8  ;;  %vm432_vm8 = vcmp.eq.f32.partialorder %v431_v9, 8.507059e+37 }
 0x9cc   :  { %v836_v3 = vpop.eup %835 }
 0x9cd   :  { %v423_v4 = vmul.f32 %v836_v3, %v421_v2  ;;  %vm428_vm0 = vweird.f32 %v836_v3 }
 0x9ce   :  { %vm429_vm7 = vmor %vm427_vm4, %vm428_vm0  ;;  %vm240_vm4 = vcmask 257026  }
 0x9cf   :  { %v424_v5 = vsub.f32 1.0, %v423_v4 }
 0x9d1   :  { %v425_v6 = vmul.f32 %v836_v3, %v424_v5 }
 0x9d3   :  { %v426_v7 = vadd.f32 %v836_v3, %v425_v6 }
 0x9d5   :  { %v430_v11 = vsel %vm429_vm7, %v836_v3, %v426_v7  ;;  %vm315_vm7 = vcmask 259076  }
 0x9d6   :  { %v435_v14 = vsel %vm432_vm8, %v434_v12, %v430_v11  ;;  %vm390_vm8 = vcmask 261126  }
 0x9d7   :  { %v441_v17 = vmul.f32 %v439_v16, %v435_v14 }
 0xa34   :  { %v444_v13 = vpop.permute.xlu1 %443 }
 0xa35   :  { %v446_v15 = vmul.f32 %v444_v13, %v435_v14 }
 0xa37   :  { %448 = vrot.lane.b32.xlu2 %v446_v15, %s973_s3 }
 0xa91   :  { %v449_v18 = vpop.permute.xlu2 %448 }
 0xa92   :  { %v451_v19 = vadd.f32 %v449_v18, %v441_v17 }
 0xa94   :  { %837 = vtanh.f32 %v451_v19  ;;  %v510_v10 = vrot.slane %v451_v19, 6 }
 0xa9a   :  { %v838_v20 = vpop.eup %837 }
 0xa9b   :  { %454 = vrot.lane.b32.xlu0 %v838_v20, %s972_s24 }
 0xb0d   :  { %v455_v21 = vpop.permute.xlu0 %454 }
 0xb0e   :  { %v457_v22 = vmul.f32 %v455_v21, %v435_v14 }
 0xb10   :  { %459 = vrot.lane.b32.xlu1 %v457_v22, %s973_s3 }
 0xb82   :  { %v460_v23 = vpop.permute.xlu1 %459 }
 0xb83   :  { %462 = vst.msk [vmem:[#allocation2 + $0x8] sm:$0x3] %vm168_vm5, %v460_v23  ;;  %779 = vmatmul.msk.f32.vlgmr.msra.gmra.mxu3 %vm102_vm6, %v460_v23 }
 0xc06   :  { %v482_v24 = vpop.f32.mrf.mxu3 }
 0xc07   :  { %v486_v25 = vrot.slane %v482_v24, 6 }
 0xc09   :  { %v488_v26 = vadd.f32 %v486_v25, %v1125_v59 }
 0xc0b   :  { %839 = vtanh.f32 %v488_v26  ;;  %v780_v29 = vmul.f32 -1.442695, %v488_v26 }
 0xc0d   :  { %841 = vpow2.f32 %v780_v29 }
 0xc11   :  { %v840_v28 = vpop.eup %839 }
 0xc12   :  { %514 = vrot.lane.b32.xlu2 %v840_v28, %s972_s24 }
 0xc13   :  { %v842_v30 = vpop.eup %841 }
 0xc14   :  { %v492_v31 = vadd.f32 1.0, %v842_v30 }
 0xc16   :  { %843 = vrcp.f32 %v492_v31  ;;  %v504_v37 = vand.u32 2147483648, %v492_v31  ;;  %vm498_vm9 = vweird.f32 %v492_v31  ;;  %v502_v38 = vand.u32 2147483647, %v492_v31 }
 0xc18   :  { %v505_v40 = vor.u32 1.1754944e-38, %v504_v37  ;;  %vm503_vm11 = vcmp.eq.f32.partialorder %v502_v38, 8.507059e+37 }
 0xc1c   :  { %v844_v32 = vpop.eup %843 }
 0xc1d   :  { %v494_v33 = vmul.f32 %v844_v32, %v492_v31  ;;  %vm499_vm5 = vweird.f32 %v844_v32 }
 0xc1e   :  { %vm500_vm10 = vmor %vm498_vm9, %vm499_vm5 }
 0xc1f   :  { %v495_v34 = vsub.f32 1.0, %v494_v33 }
 0xc21   :  { %v496_v35 = vmul.f32 %v844_v32, %v495_v34 }
 0xc23   :  { %v497_v36 = vadd.f32 %v844_v32, %v496_v35 }
 0xc25   :  { %v501_v39 = vsel %vm500_vm10, %v844_v32, %v497_v36 }
 0xc26   :  { %v506_v42 = vsel %vm503_vm11, %v505_v40, %v501_v39 }
 0xc27   :  { %v512_v44 = vmul.f32 %v510_v10, %v506_v42 }
 0xc6c   :  { %v515_v41 = vpop.permute.xlu2 %514 }
 0xc6d   :  { %v517_v43 = vmul.f32 %v515_v41, %v506_v42 }
 0xc6f   :  { %519 = vrot.lane.b32.xlu0 %v517_v43, %s973_s3 }
 0xce1   :  { %v520_v45 = vpop.permute.xlu0 %519 }
 0xce2   :  { %v522_v46 = vadd.f32 %v520_v45, %v512_v44 }
 0xce4   :  { %845 = vtanh.f32 %v522_v46  ;;  %v584_v11 = vrot.slane %v522_v46, 6  ;;  %v692_v46 = vld [vmem:[%s1192_s4 + $0x10] sm:$0xff] }
 0xcea   :  { %v846_v47 = vpop.eup %845 }
 0xceb   :  { %525 = vrot.lane.b32.xlu1 %v846_v47, %s972_s24  ;;  %v691_v47 = vld [vmem:[%s1192_s4 + $0x8] sm:$0xff] }
 0xd5d   :  { %v526_v48 = vpop.permute.xlu1 %525 }
 0xd5e   :  { %v528_v49 = vmul.f32 %v526_v48, %v506_v42  ;;  %v690_v48 = vld [vmem:[%s1192_s4] sm:$0xff] }
 0xd60   :  { %v534_v50 = vrot.slane %v528_v49, 2 }
 0xd62   :  { %535 = vrot.lane.b32.xlu2 %v534_v50, %s973_s3 }
 0xdbc   :  { %v536_v51 = vpop.permute.xlu2 %535 }
 0xdbd   :  { %781 = vmatmul.msk.f32.vlgmr.msrb.gmra.mxu0 %vm102_vm6, %v536_v51 }
 0xe3a   :  { %v556_v52 = vpop.f32.mrf.mxu0 }
 0xe3b   :  { %v560_v53 = vrot.slane %v556_v52, 4 }
 0xe3d   :  { %v562_v55 = vadd.f32 %v560_v53, %v1125_v59 }
 0xe3f   :  { %847 = vtanh.f32 %v562_v55  ;;  %v782_v57 = vmul.f32 -1.442695, %v562_v55 }
 0xe41   :  { %849 = vpow2.f32 %v782_v57 }
 0xe45   :  { %v848_v56 = vpop.eup %847 }
 0xe46   :  { %588 = vrot.lane.b32.xlu0 %v848_v56, %s972_s24  ;;  %v798_v56 = vld [vmem:[%s1193_s5] ss:$0 sm:$0xff] }
 0xe47   :  { %v850_v58 = vpop.eup %849 }
 0xe48   :  { %v566_v60 = vadd.f32 1.0, %v850_v58 }
 0xe4a   :  { %851 = vrcp.f32 %v566_v60  ;;  %v578_v3 = vand.u32 2147483648, %v566_v60  ;;  %vm572_vm13 = vweird.f32 %v566_v60  ;;  %v576_v4 = vand.u32 2147483647, %v566_v60 }
 0xe4c   :  { %v579_v6 = vor.u32 1.1754944e-38, %v578_v3  ;;  %vm577_vm15 = vcmp.eq.f32.partialorder %v576_v4, 8.507059e+37 }
 0xe50   :  { %v852_v62 = vpop.eup %851 }
 0xe51   :  { %v568_v63 = vmul.f32 %v852_v62, %v566_v60  ;;  %vm573_vm12 = vweird.f32 %v852_v62 }
 0xe52   :  { %vm574_vm14 = vmor %vm572_vm13, %vm573_vm12 }
 0xe53   :  { %v569_v0 = vsub.f32 1.0, %v568_v63 }
 0xe55   :  { %v570_v1 = vmul.f32 %v852_v62, %v569_v0 }
 0xe57   :  { %v571_v2 = vadd.f32 %v852_v62, %v570_v1 }
 0xe59   :  { %v575_v5 = vsel %vm574_vm14, %v852_v62, %v571_v2 }
 0xe5a   :  { %v580_v8 = vsel %vm577_vm15, %v579_v6, %v575_v5 }
 0xe5b   :  { %v586_v12 = vmul.f32 %v584_v11, %v580_v8 }
 0xeb8   :  { %v589_v7 = vpop.permute.xlu0 %588 }
 0xeb9   :  { %v591_v9 = vmul.f32 %v589_v7, %v580_v8 }
 0xebb   :  { %593 = vrot.lane.b32.xlu1 %v591_v9, %s973_s3 }
 0xf2d   :  { %v594_v13 = vpop.permute.xlu1 %593 }
 0xf2e   :  { %v596_v14 = vadd.f32 %v594_v13, %v586_v12 }
 0xf30   :  { %853 = vtanh.f32 %v596_v14  ;;  %v658_v40 = vrot.slane %v596_v14, 6 }
 0xf36   :  { %v854_v15 = vpop.eup %853 }
 0xf37   :  { %599 = vrot.lane.b32.xlu2 %v854_v15, %s972_s24 }
 0xf91   :  { %v600_v16 = vpop.permute.xlu2 %599 }
 0xf92   :  { %v602_v17 = vmul.f32 %v600_v16, %v580_v8 }
 0xf94   :  { %v608_v18 = vrot.slane %v602_v17, 4 }
 0xf96   :  { %609 = vrot.lane.b32.xlu0 %v608_v18, %s973_s3 }
0x1008   :  { %v610_v19 = vpop.permute.xlu0 %609 }
0x1009   :  { %783 = vmatmul.msk.f32.vlgmr.msra.gmra.mxu1 %vm102_vm6, %v610_v19 }
0x1086   :  { %v630_v20 = vpop.f32.mrf.mxu1 }
0x1087   :  { %v634_v21 = vrot.slane %v630_v20, 2 }
0x1089   :  { %v636_v22 = vadd.f32 %v634_v21, %v1125_v59 }
0x108b   :  { %855 = vtanh.f32 %v636_v22  ;;  %v784_v24 = vmul.f32 -1.442695, %v636_v22 }
0x108d   :  { %857 = vpow2.f32 %v784_v24 }
0x1091   :  { %v856_v23 = vpop.eup %855 }
0x1092   :  { %662 = vrot.lane.b32.xlu1 %v856_v23, %s972_s24 }
0x1093   :  { %v858_v25 = vpop.eup %857 }
0x1094   :  { %v640_v26 = vadd.f32 1.0, %v858_v25 }
0x1096   :  { %859 = vrcp.f32 %v640_v26  ;;  %v652_v59 = vand.u32 2147483648, %v640_v26  ;;  %vm646_vm2 = vweird.f32 %v640_v26  ;;  %v650_v33 = vand.u32 2147483647, %v640_v26 }
0x1098   :  { %v653_v35 = vor.u32 1.1754944e-38, %v652_v59  ;;  %vm651_vm0 = vcmp.eq.f32.partialorder %v650_v33, 8.507059e+37 }
0x109a   :  { %237 = vrot.lane.b32.xlu1 %v1100_v61, %s973_s3 }
0x109c   :  { %v860_v28 = vpop.eup %859 }
0x109d   :  { %v642_v29 = vmul.f32 %v860_v28, %v640_v26  ;;  %vm647_vm1 = vweird.f32 %v860_v28 }
0x109e   :  { %vm648_vm3 = vmor %vm646_vm2, %vm647_vm1 }
0x109f   :  { %v643_v30 = vsub.f32 1.0, %v642_v29 }
0x10a1   :  { %v644_v31 = vmul.f32 %v860_v28, %v643_v30 }
0x10a2   :  { %530 = vrot.lane.b32.xlu1 %v528_v49, %s973_s3 }
0x10a3   :  { %v645_v32 = vadd.f32 %v860_v28, %v644_v31 }
0x10a5   :  { %v649_v34 = vsel %vm648_vm3, %v860_v28, %v645_v32 }
0x10a6   :  { %v654_v36 = vsel %vm651_vm0, %v653_v35, %v649_v34 }
0x10a7   :  { %v660_v41 = vmul.f32 %v658_v40, %v654_v36 }
0x1104   :  { %v663_v61 = vpop.permute.xlu1 %662 }
0x1105   :  { %v665_v37 = vmul.f32 %v663_v61, %v654_v36 }
0x1107   :  { %667 = vrot.lane.b32.xlu2 %v665_v37, %s973_s3 }
0x110c   :  { %v238_v38 = vpop.permute.xlu1 %237 }
0x110d   :  { %241 = vst.msk [vmem:[#allocation2] sm:$0xc] %vm240_vm4, %v238_v38 }
0x110f   :  { %312 = vrot.lane.b32.xlu2 %v1109_v27, %s973_s3  ;;  %v693_v27 = vld [vmem:[%s1192_s4 + $0x18] sm:$0xff]  ;;  %s975_s4 = smov [#allocation8]  }
0x1110   :  { %716 = vmatpush.msrb.mxu2 %v693_v27  ;;  %s737_s12 = sshll.u32 %s975_s4, 4  ;;  %s738_s12 = int_to_ptr.vmem [resolvable:$true] %s737_s12 }
0x1112   :  { %717 = vmatpush.msrb.mxu2 %v692_v46 }
0x1114   :  { %v531_v39 = vpop.permute.xlu1 %530  ;;  %718 = vmatpush.msrb.mxu2 %v691_v47 }
0x1115   :  { %533 = vst.msk [vmem:[#allocation2 + $0x8] sm:$0xc] %vm240_vm4, %v531_v39 }
0x1116   :  { %719 = vmatpush.msrb.mxu2 %v690_v48 }
0x1117   :  { %604 = vrot.lane.b32.xlu2 %v602_v17, %s973_s3 }
0x1161   :  { %v668_v42 = vpop.permute.xlu2 %667 }
0x1162   :  { %v670_v43 = vadd.f32 %v668_v42, %v660_v41 }
0x1164   :  { %861 = vtanh.f32 %v670_v43  ;;  %684 = vrot.lane.b32.xlu1 %v670_v43, %s974_s25 }
0x1169   :  { %v313_v10 = vpop.permute.xlu2 %312 }
0x116a   :  { %v862_v44 = vpop.eup %861  ;;  %316 = vst.msk [vmem:[#allocation2] sm:$0x30] %vm315_vm7, %v313_v10 }
0x116b   :  { %673 = vrot.lane.b32.xlu0 %v862_v44, %s972_s24 }
0x1171   :  { %v605_v45 = vpop.permute.xlu2 %604 }
0x1172   :  { %607 = vst.msk [vmem:[#allocation2 + $0x8] sm:$0x30] %vm315_vm7, %v605_v45 }
0x1173   :  { %387 = vrot.lane.b32.xlu0 %v1118_v54, %s973_s3 }
0x11d6   :  { %v685_v54 = vpop.permute.xlu1 %684 }
0x11d7   :  { %687 = vst.msk [vmem:[#allocation9 - $0x6] sm:$0xc0] %vm390_vm8, %v685_v54 }
0x11d8   :  { %753 = dma.vmem_to_hbm [thread:$0]  %s749_s0, 32, %s751_s1, [#allocation10]  }
0x11dd   :  { %v674_v49 = vpop.permute.xlu0 %673 }
0x11de   :  { %v676_v50 = vmul.f32 %v674_v49, %v654_v36 }
0x11e0   :  { %678 = vrot.lane.b32.xlu0 %v676_v50, %s973_s3 }
0x11e5   :  { %v388_v51 = vpop.permute.xlu0 %387 }
0x11e6   :  { %391 = vst.msk [vmem:[#allocation2] sm:$0xc0] %vm390_vm8, %v388_v51 }
0x11ed   :  { %v688_v52 = vld [vmem:[#allocation2] sm:$0xff] }
0x11ee   :  { %785 = vmatmul.msk.f32.vlgmr.msrb.gmra.mxu2 %vm102_vm6, %v688_v52 }
0x1252   :  { %v679_v53 = vpop.permute.xlu0 %678 }
0x1253   :  { %681 = vst.msk [vmem:[#allocation2 + $0x8] sm:$0xc0] %vm390_vm8, %v679_v53 }
0x1254   :  { %682 = vst.msk [vmem:[#allocation8 - $0x6] sm:$0xc0] %vm390_vm8, %v679_v53 }
0x1255   :  { %742 = dma.vmem_to_hbm [thread:$0]  %s738_s12, 32, %s740_s15, [#allocation5]  }
0x125a   :  { %v689_v55 = vld [vmem:[#allocation2 + $0x8] sm:$0xff] }
0x125b   :  { %786 = vmatmul.msk.f32.gmra.mxu2 %vm102_vm6, %v689_v55  ;;  %vm727_vm6 = vcmask 48128  }
0x1271   :  { %v721_v57 = vpop.f32.mrf.mxu2 }
0x1272   :  { %v722_v58 = vadd.f32 %v798_v56, %v721_v57 }
0x1274   :  { %728 = vst.msk [vmem:[%s1194_s6] sm:$0xff] %vm727_vm6, %v722_v58 }
0x12de   :  { %v724_v60 = vpop.f32.mrf.mxu2 }
0x12df   :  { %v725_v62 = vadd.f32 %v798_v56, %v724_v60 }
0x12e1   :  { %729 = vst.msk [vmem:[%s1194_s6 + $0x8] sm:$0xff] %vm727_vm6, %v725_v62 }
0x12e2   :  { %963 = dma.done.wait [#allocation5], 32  }
0x12e3   :  { %964 = vsyncadd [#allocation5], 4294967264 }
0x12e4   :  { %965 = dma.done.wait [#allocation10], 32  }
0x12e5   :  { %966 = vsyncadd [#allocation10], 4294967264 }
0x12e6   :  { %764 = vsyncpa [#allocation4], 1 }
0x12e7   :  { %765 = vsyncpa [#allocation7], 1 }
0x12e8   :  { %766 = vsyncpa [#allocation5], 1 }
0x12e9   :  { %767 = vsyncpa [#allocation10], 1 }

</bundles_post_ra>
